<compile_context>
chip_gen: v6e
topology: v6e:2x2x1
jax: 0.10.0
libtpu: 0.0.40
codegen_flags: <defaults>
</compile_context>

<pallas_src>
import functools

import jax
import jax.numpy as jnp
from jax import lax
from jax.experimental import pallas as pl
from jax.experimental.pallas import tpu as pltpu


def _round_up(x, m):
    return (x + m - 1) // m * m


def _dqn_kernel(x_ref, w1t_ref, b1_ref, w2_ref, b2_ref, o_ref):
    """One batch tile.

    x_ref   : (TB, D)  caller dtype (cast to bf16 for the MXU)
    w1t_ref : (Hp, D)  bf16, PyTorch (out, in) layout, zero-padded rows
    b1_ref  : (Hp, 1)  f32
    w2_ref  : (Hp, 1)  f32 second-layer weights as a column
    b2_ref  : (1, 1)   f32 scalar in SMEM
    o_ref   : (1, TB)  f32 lane-dense output row
    """
    x = x_ref[...].astype(jnp.bfloat16)          # no-op if x is already bf16
    # hidden^T = W1 @ x^T : (Hp, TB); bf16 MXU, f32 accumulation.
    ht = lax.dot_general(
        w1t_ref[...], x,
        dimension_numbers=(((1,), (1,)), ((), ())),
        preferred_element_type=jnp.float32)
    h = jnp.maximum(ht + b1_ref[...], 0.0)       # bias + ReLU in f32 (VPU)
    # Layer 2 has a single output unit: VPU multiply + sublane (XLU) reduce,
    # landing directly as a lane-dense (1, TB) row (unmasked stores).
    v = jnp.sum(h * w2_ref[...], axis=0, keepdims=True) + b2_ref[0, 0]
    o_ref[...] = v.astype(o_ref.dtype)


def prepare_dqn_params(w1, b1, w2, b2):
    """One-time layout prep (hoisted out of the per-call forward path).

    Takes PyTorch nn.Linear layouts:
      w1: (H, D), b1: (H,), w2: (1, H), b2: (1,)
    Padded hidden rows have zero W1 row, zero b1 and zero w2 -> contribute 0.
    """
    H, D = w1.shape
    Hp = _round_up(max(H, 8), 8)                 # sublane-pad only
    w1t = jnp.zeros((Hp, D), jnp.bfloat16).at[:H].set(w1.astype(jnp.bfloat16))
    b1c = jnp.zeros((Hp, 1), jnp.float32).at[:H, 0].set(b1.astype(jnp.float32))
    w2c = jnp.zeros((Hp, 1), jnp.float32).at[:H, 0].set(
        w2.reshape(H).astype(jnp.float32))
    b2s = jnp.asarray(b2, jnp.float32).reshape(1, 1)
    return w1t, b1c, w2c, b2s


def _vmem_budget_bytes():
    # Stay well inside every generation's *default* scoped-VMEM limit
    # (v5e 16 MiB, v6e/v7x 32 MiB) so vmem_limit_bytes never needs raising.
    try:
        kind = jax.devices()[0].device_kind.lower()
    except Exception:
        return 10 << 20
    if "v6" in kind or "v7" in kind:
        return 20 << 20
    return 10 << 20


def _choose_block_b(batch, d, hp, x_itemsize):
    """Batch-tile rows: multiple of 8 (sublane rule), multiple of 128 when the
    grid has >1 tile (lane-dense output rule), sized against scoped VMEM with
    double-buffered x tiles, and shrunk so large batches get >=4 tiles
    (v7x two-TensorCore split + DMA/compute overlap)."""
    if batch < 8:
        return batch
    b8 = _round_up(batch, 8)
    if b8 <= 256:
        return b8                                     # single tile
    d_pad = _round_up(d, 128)                         # lane-padded VMEM footprint
    weights = hp * d_pad * 2 + 2 * hp * 4             # pinned w1t + b1 + w2
    budget = max(_vmem_budget_bytes() - weights, 1 << 20)
    per_row = 2 * d_pad * x_itemsize + hp * 4 + 4     # dbl-buf x + hidden + out
    tb = budget // per_row
    tb = max(128, min(512, (tb // 128) * 128))
    while tb > 128 and pl.cdiv(batch, tb) < 4:
        tb -= 128
    return int(tb)


@functools.partial(jax.jit, static_argnames=("block_b",))
def dqn_forward(x, w1t, b1c, w2c, b2s, *, block_b=None):
    """x: (B, n_inputs); params from prepare_dqn_params(). Returns (B, 1) f32.

    x streams HBM->VMEM in its own dtype (pass bf16 x to halve HBM traffic);
    the bf16 cast for the MXU happens in-kernel, so no extra HBM pass is added.
    """
    B, D = x.shape
    Hp = w1t.shape[0]
    assert w1t.shape == (Hp, D)
    assert b1c.shape == (Hp, 1)
    assert w2c.shape == (Hp, 1)
    assert b2s.shape == (1, 1)

    TB = int(block_b) if block_b is not None else _choose_block_b(
        B, D, Hp, x.dtype.itemsize)
    num_tiles = pl.cdiv(B, TB)
    # Validate explicitly supplied tile sizes against TPU layout rules.
    if TB != B and TB % 8 != 0:
        raise ValueError("block_b must be a multiple of 8 (or equal the batch)")
    if num_tiles > 1 and TB % 128 != 0:
        raise ValueError("block_b must be a multiple of 128 when it does not "
                         "cover the whole batch (lane-dense output tiles)")
    Bp = num_tiles * TB   # output over-allocation; extra lanes sliced off below

    out = pl.pallas_call(
        _dqn_kernel,
        out_shape=jax.ShapeDtypeStruct((1, Bp), jnp.float32),
        grid=(num_tiles,),
        in_specs=[
            # x streams over the batch; partial last tile reads unspecified OOB
            # rows whose results land only in output lanes >= B (sliced off).
            pl.BlockSpec((TB, D), lambda i: (i, 0)),
            # Tiny weights pinned in VMEM across every grid step.
            pl.BlockSpec((Hp, D), lambda i: (0, 0)),
            pl.BlockSpec((Hp, 1), lambda i: (0, 0)),
            pl.BlockSpec((Hp, 1), lambda i: (0, 0)),
            # Scalar bias in SMEM: no 8x128 VMEM tile just to add one number.
            pl.BlockSpec(memory_space=pltpu.MemorySpace.SMEM),
        ],
        out_specs=pl.BlockSpec((1, TB), lambda i: (0, i)),
        compiler_params=pltpu.CompilerParams(
            # batch tiles are independent -> v7x's two TensorCores split them.
            dimension_semantics=("parallel",),
        ),
    )(x, w1t, b1c, w2c, b2s)
    return out[0, :B].reshape(B, 1)


if __name__ == "__main__":
    key = jax.random.PRNGKey(0)
    kx, k1, k2, k3, k4 = jax.random.split(key, 5)

    batch = 8
    n_inputs = 32
    n_hidden = (n_inputs + 2) // 2   # module default -> 17

    # PyTorch nn.Linear-style init: U(+-1/sqrt(fan_in)), weight layout (out, in).
    bound1 = 1.0 / (n_inputs ** 0.5)
    bound2 = 1.0 / (n_hidden ** 0.5)
    w1 = jax.random.uniform(k1, (n_hidden, n_inputs), jnp.float32, -bound1, bound1)
    b1 = jax.random.uniform(k2, (n_hidden,), jnp.float32, -bound1, bound1)
    w2 = jax.random.uniform(k3, (1, n_hidden), jnp.float32, -bound2, bound2)
    b2 = jax.random.uniform(k4, (1,), jnp.float32, -bound2, bound2)

    params = prepare_dqn_params(w1, b1, w2, b2)   # one-time layout prep
    x = jax.random.normal(kx, (batch, n_inputs), jnp.float32)

    out = jax.block_until_ready(dqn_forward(x, *params))
    assert out.shape == (batch, 1)

    # Reference with matching bf16 first-layer operands (f32 accumulation).
    def ref_fwd(xr):
        h = jnp.dot(xr.astype(jnp.bfloat16), w1.T.astype(jnp.bfloat16),
                    preferred_element_type=jnp.float32) + b1
        h = jnp.maximum(h, 0.0)
        return (h * w2.reshape(-1)).sum(-1, keepdims=True) + b2

    assert jnp.allclose(out, ref_fwd(x), atol=1e-4, rtol=1e-4), "mismatch"

    # Batch that is not a multiple of the sublane tile (partial-block path).
    x_odd = x[:5]
    out_odd = jax.block_until_ready(dqn_forward(x_odd, *params))
    assert out_odd.shape == (5, 1)
    assert jnp.allclose(out_odd, ref_fwd(x_odd), atol=1e-4, rtol=1e-4), "odd mismatch"

    # Larger batch exercising the multi-tile, lane-dense-output path.
    x_big = jax.random.normal(kx, (300, n_inputs), jnp.float32)
    out_big = jax.block_until_ready(dqn_forward(x_big, *params))
    assert out_big.shape == (300, 1)
    assert jnp.allclose(out_big, ref_fwd(x_big), atol=1e-4, rtol=1e-4), "big mismatch"

    print("KERNEL_OK")
</pallas_src>

<mosaic_0001>
module attributes {stable_mosaic.version = 11 : i64} {
  func.func @_dqn_kernel(%arg0: i32, %arg1: memref<8x32xf32, #tpu.memory_space<vmem>>, %arg2: memref<24x32xbf16, #tpu.memory_space<vmem>>, %arg3: memref<24x1xf32, #tpu.memory_space<vmem>>, %arg4: memref<24x1xf32, #tpu.memory_space<vmem>>, %arg5: memref<1x1xf32, #tpu.memory_space<smem>>, %arg6: memref<1x8xf32, #tpu.memory_space<vmem>>) attributes {dimension_semantics = [#tpu.dimension_semantics<parallel>], iteration_bounds = array<i64: 1>, scalar_prefetch = 0 : i64, scratch_operands = 0 : i64, tpu.core_type = #tpu.core_type<tc>, window_params = [{transform_indices = @transform_0, window_bounds = array<i64: 8, 32>}, {pipeline_mode = #tpu.pipeline_mode<synchronous>, transform_indices = @transform_1, window_bounds = array<i64: 24, 32>}, {pipeline_mode = #tpu.pipeline_mode<synchronous>, transform_indices = @transform_2, window_bounds = array<i64: 24, 1>}, {pipeline_mode = #tpu.pipeline_mode<synchronous>, transform_indices = @transform_3, window_bounds = array<i64: 24, 1>}, {transform_indices = @transform_4, window_bounds = array<i64: 1, 1>}, {transform_indices = @transform_5, window_bounds = array<i64: 1, 8>}]} {
    %c0 = arith.constant 0 : index
    %c0_0 = arith.constant 0 : index
    %0 = vector.load %arg1[%c0, %c0_0] : memref<8x32xf32, #tpu.memory_space<vmem>>, vector<8x32xf32>
    %1 = arith.truncf %0 : vector<8x32xf32> to vector<8x32xbf16>
    %c0_1 = arith.constant 0 : index
    %c0_2 = arith.constant 0 : index
    %2 = vector.load %arg2[%c0_1, %c0_2] : memref<24x32xbf16, #tpu.memory_space<vmem>>, vector<24x32xbf16>
    %cst = arith.constant dense<0.000000e+00> : vector<24x8xf32>
    %3 = tpu.matmul %2, %1, %cst {dimension_numbers = #tpu.dot_dimension_numbers<[1], [1], [0], [0], [0, 0, 1, 0], [], []>} : vector<24x32xbf16>, vector<8x32xbf16>, vector<24x8xf32> -> vector<24x8xf32>
    %c0_3 = arith.constant 0 : index
    %c0_4 = arith.constant 0 : index
    %4 = vector.load %arg3[%c0_3, %c0_4] : memref<24x1xf32, #tpu.memory_space<vmem>>, vector<24x1xf32>
    %5 = vector.broadcast %4 : vector<24x1xf32> to vector<24x8xf32>
    %6 = arith.addf %3, %5 : vector<24x8xf32>
    %cst_5 = arith.constant 0.000000e+00 : f32
    %7 = vector.broadcast %cst_5 : f32 to vector<24x8xf32>
    %8 = arith.maximumf %6, %7 : vector<24x8xf32>
    %c0_6 = arith.constant 0 : index
    %c0_7 = arith.constant 0 : index
    %9 = vector.load %arg4[%c0_6, %c0_7] : memref<24x1xf32, #tpu.memory_space<vmem>>, vector<24x1xf32>
    %10 = vector.broadcast %9 : vector<24x1xf32> to vector<24x8xf32>
    %11 = arith.mulf %8, %10 : vector<24x8xf32>
    %cst_8 = arith.constant dense<0.000000e+00> : vector<8xf32>
    %12 = vector.multi_reduction <add>, %11, %cst_8 [0] : vector<24x8xf32> to vector<8xf32>
    %13 = vector.shape_cast %12 : vector<8xf32> to vector<1x8xf32>
    %c0_9 = arith.constant 0 : index
    %c0_10 = arith.constant 0 : index
    %14 = memref.load %arg5[%c0_9, %c0_10] : memref<1x1xf32, #tpu.memory_space<smem>>
    %15 = vector.broadcast %14 : f32 to vector<1x8xf32>
    %16 = arith.addf %13, %15 : vector<1x8xf32>
    %c0_11 = arith.constant 0 : index
    %c0_12 = arith.constant 0 : index
    %17 = vector.load %arg6[%c0_11, %c0_12] : memref<1x8xf32, #tpu.memory_space<vmem>>, vector<1x8xf32>
    tpu.vector_store %arg6[%c0_11, %c0_12], %16 {strides = array<i32>} : memref<1x8xf32, #tpu.memory_space<vmem>>, vector<1x8xf32>,
    return
  }
  func.func @transform_0(%arg0: i32) -> (i32, i32) {
    %c0_i32 = arith.constant 0 : i32
    %c0_i32_0 = arith.constant 0 : i32
    return %arg0, %c0_i32 : i32, i32
  }
  func.func @transform_1(%arg0: i32) -> (i32, i32) {
    %c0_i32 = arith.constant 0 : i32
    %c0_i32_0 = arith.constant 0 : i32
    %c0_i32_1 = arith.constant 0 : i32
    return %c0_i32, %c0_i32_0 : i32, i32
  }
  func.func @transform_2(%arg0: i32) -> (i32, i32) {
    %c0_i32 = arith.constant 0 : i32
    %c0_i32_0 = arith.constant 0 : i32
    %c0_i32_1 = arith.constant 0 : i32
    return %c0_i32, %c0_i32_0 : i32, i32
  }
  func.func @transform_3(%arg0: i32) -> (i32, i32) {
    %c0_i32 = arith.constant 0 : i32
    %c0_i32_0 = arith.constant 0 : i32
    %c0_i32_1 = arith.constant 0 : i32
    return %c0_i32, %c0_i32_0 : i32, i32
  }
  func.func @transform_4(%arg0: i32) -> (i32, i32) {
    %c0_i32 = arith.constant 0 : i32
    %c0_i32_0 = arith.constant 0 : i32
    %c0_i32_1 = arith.constant 0 : i32
    return %c0_i32, %c0_i32_0 : i32, i32
  }
  func.func @transform_5(%arg0: i32) -> (i32, i32) {
    %c0_i32 = arith.constant 0 : i32
    %c0_i32_0 = arith.constant 0 : i32
    return %c0_i32, %arg0 : i32, i32
  }
}

</mosaic_0001>

<bundles_post_ra>
// kernel: dqn_forward.1
= control target key start
LH: loop header
LB: loop body
LE: loop exit
PB: predicated region body
PF: predicated region fallthrough
CT: control target
= control target key end

     0   :  { %vm54_vm0 = vcmask 261120   ;;  %v209_v3 = vmov 0   ;;  %s278_s0 = inlined_call_operand.vmem [shape: f32[8,32], index: 0, kind: input, shape index: {}]   ;;  %s279_s1 = inlined_call_operand.vmem [shape: bf16[24,32], index: 1, kind: input, shape index: {}]   ;;  %s280_s2 = inlined_call_operand.vmem [shape: f32[24,1], index: 2, kind: input, shape index: {}]   ;;  %s281_s3 = inlined_call_operand.vmem [shape: f32[24,1], index: 3, kind: input, shape index: {}]   ;;  %s282_s4 = inlined_call_operand.<no memory space> [shape: f32[1,1], index: 4, kind: input, shape index: {}]   ;;  %s283_s5 = inlined_call_operand.hbm [shape: f32[1,8], index: 5, kind: output, shape index: {}]  }
   0x1   :  { %v23_v0 = vld [vmem:[%s278_s0] sm:$0xff]  ;;  %183 = vset.pattern.permute.xlu0 %v209_v3  ;;  %184 = vset.pattern.permute.xlu1 %v209_v3  ;;  %v30_v5 = vld [vmem:[%s280_s2 + $0x10] sm:$0xff] }
   0x2   :  { %v24_v1 = vpack.c.bf16 %v23_v0, %v23_v0  ;;  %v185_v2 = vld [vmem:[%s279_s1] sm:$0xff]  }
   0x3   :  { %v28_v4 = vld [vmem:[%s280_s2] sm:$0xff]  ;;  %176 = vmatprep.mubr.msk.bf16.mxu0 %vm54_vm0, %v185_v2 }
   0x4   :  { %180 = vmatprep.subr.msk.bf16.mxu0 %vm54_vm0, %v24_v1  ;;  %v62_v6 = vsel %vm54_vm0, %v24_v1, 0  ;;  %33 = vperm.xlu0 %183, %v28_v4  }
   0x5   :  { %175 = vmatpush3.bf16.xpose.msra.mxu0 %v62_v6 }
   0x6   :  { %11 = vsyncpa [#allocation4], 0  ;;  %43 = vperm.xlu1 %184, %v30_v5   ;;  %v29_v7 = vld [vmem:[%s280_s2 + $0x8] sm:$0xff]  ;;  %v115_v8 = vld [vmem:[%s281_s3] sm:$0xff]  ;;  %vm136_vm1 = vcmask 64512   ;;  %v149_v41 = vstv %s282_s4  ;;  %vm151_vm2 = vcmask 57344  }
   0x7   :  { %v186_v9 = vld [vmem:[%s279_s1 + $0x8] ss:$0 sps:$4 sm:$0xff]   ;;  %v117_v11 = vld [vmem:[%s281_s3 + $0x10] sm:$0xff] }
   0x8   :  { %38 = vperm.xlu0 %183, %v29_v7   ;;  %v116_v10 = vld [vmem:[%s281_s3 + $0x8] sm:$0xff]  ;;  %s210_s3 = smov [#allocation3]  }
   0x9   :  { %s159_s10 = sshll.u32 %s210_s3, 4  ;;  %s160_s10 = int_to_ptr.vmem [resolvable:$true] %s159_s10 }
   0xa   :  { %120 = vperm.xlu1 %184, %v115_v8   ;;  %s187_s11 = scalar_lea.vmem %s160_s10, 16  ;;  %s191_s12 = scalar_lea.vmem %s160_s10, 32 }
   0xb   :  { %p188_p0 = scmp.ne.s32.totalorder %s160_s10, %s187_s11  ;;  %p192_p1 = scmp.lt.s32.totalorder %s160_s10, %s160_s10 }
   0xc   :  { %177 = vmatmul.mubr.msk.bf16.vlgmr.msra.gmra.mxu0 %vm54_vm0, %v186_v9  ;;  %125 = vperm.xlu0 %183, %v116_v10   ;;  %p193_p2 = scmp.lt.s32.totalorder %s191_s12, %s187_s11 }
   0xe   :  { %130 = vperm.xlu1 %184, %v117_v11   ;;  %p194_p3 = por %p193_p2, %p192_p1 }
  0x10   :  { %p195_p4 = pnand %p194_p3, %p188_p0 }
  0x7f   :  { %v34_v13 = vpop.permute.xlu0 %33 }
  0x81   :  { %v44_v12 = vpop.permute.xlu1 %43 }
  0x83   :  { %v39_v19 = vpop.permute.xlu0 %38 }
  0x85   :  { %v121_v15 = vpop.permute.xlu1 %120 }
  0x87   :  { %v126_v28 = vpop.permute.xlu0 %125 }
  0x89   :  { %v131_v25 = vpop.permute.xlu1 %130 }
  0xcc   :  { %v178_v14 = vpop.f32.mrf.mxu0 }
  0xcd   :  { %v107_v17 = vadd.f32 %v178_v14, %v44_v12 }
  0xce   :  { %v98_v16 = vpop.f32.mrf.mxu0 }
  0xcf   :  { %v99_v18 = vadd.f32 %v98_v16, %v34_v13  ;;  %v114_v23 = vmax.f32 %v107_v17, 0.0 }
  0xd0   :  { %v179_v20 = vpop.f32.mrf.mxu0 }
  0xd1   :  { %v112_v21 = vmax.f32 %v99_v18, 0.0  ;;  %v135_v29 = vmul.f32 %v131_v25, %v114_v23 }
  0xd2   :  { %v101_v22 = vpop.f32.mrf.mxu0 }
  0xd3   :  { %v102_v24 = vadd.f32 %v101_v22, %v39_v19  ;;  %v133_v26 = vmul.f32 %v121_v15, %v112_v21  ;;  %v140_v34 = vsel %vm136_vm1, %v135_v29, 0.0 }
  0xd5   :  { %v113_v27 = vmax.f32 %v102_v24, 0.0  ;;  %v137_v31 = vsel %vm136_vm1, %v133_v26, 0.0 }
  0xd7   :  { %v134_v30 = vmul.f32 %v126_v28, %v113_v27 }
  0xd9   :  { %v138_v32 = vsel %vm136_vm1, %v134_v30, 0.0 }
  0xda   :  { %v139_v33 = vadd.f32 %v138_v32, %v137_v31 }
  0xdc   :  { %v141_v35 = vadd.f32 %v140_v34, %v139_v33 }
  0xde   :  { %v142_v36 = vrot.slane %v141_v35, 4 }
  0xe0   :  { %v143_v37 = vadd.f32 %v142_v36, %v141_v35 }
  0xe2   :  { %v144_v38 = vrot.slane %v143_v37, 2 }
  0xe4   :  { %v145_v39 = vadd.f32 %v144_v38, %v143_v37 }
  0xe6   :  { %v146_v40 = vrot.slane %v145_v39, 1 }
  0xe8   :  { %v147_v42 = vadd.f32 %v146_v40, %v145_v39 }
  0xea   :  { %v150_v43 = vadd.f32 %v149_v41, %v147_v42 }
  0xec   :  { %152 = vst.msk [vmem:[#allocation3] sm:$0x1] %vm151_vm2, %v150_v43 }
  0xed   :  { %198 = shalt.err (!%p195_p4)
}
  0xee   :  { %162 = dma.vmem_to_hbm [thread:$0]  %s160_s10, 16, %s283_s5, [#allocation4]  }
  0xef   :  { %207 = dma.done.wait [#allocation4], 16  }
  0xf0   :  { %208 = vsyncadd [#allocation4], 4294967280 }
  0xf1   :  { %166 = vsyncpa [#allocation4], 1 }

</bundles_post_ra>
